<compile_context>
chip_gen: v6e
topology: v6e:2x2x1
jax: 0.10.0
libtpu: 0.0.40
codegen_flags: <defaults>
</compile_context>

<pallas_src>
import functools

import numpy as np
import jax
import jax.numpy as jnp
from jax.experimental import pallas as pl
from jax.experimental.pallas import tpu as pltpu

_MB = 1024 * 1024


# --------------------------- host-built matrices --------------------------- #

def _bilinear_matrix(out_size, in_size):
    """1-D interpolation weights matching F.interpolate(mode='bilinear',
    align_corners=False): out = W @ in, W shape (out_size, in_size)."""
    W = np.zeros((out_size, in_size), dtype=np.float32)
    scale = in_size / out_size
    for o in range(out_size):
        src = max((o + 0.5) * scale - 0.5, 0.0)
        i0 = min(int(np.floor(src)), in_size - 1)
        i1 = min(i0 + 1, in_size - 1)
        lam = src - i0
        W[o, i0] += 1.0 - lam
        W[o, i1] += lam
    return W


def _pool_matrix(H, W, s):
    """(s*s, H*W) averaging matrix == AdaptiveAvgPool2d((s, s)) applied to a
    row-major flattened (h*W + w) spatial axis (exact PyTorch bin edges)."""
    P = np.zeros((s * s, H * W), dtype=np.float32)
    for i in range(s):
        h0, h1 = (i * H) // s, -((-(i + 1) * H) // s)
        for j in range(s):
            w0, w1 = (j * W) // s, -((-(j + 1) * W) // s)
            val = 1.0 / ((h1 - h0) * (w1 - w0))
            for h in range(h0, h1):
                P[i * s + j, h * W + w0:h * W + w1] = val
    return P


@functools.lru_cache(maxsize=None)
def _host_matrices(H, W, sizes):
    """Cached (U_cat (HW, S), P_cat (S, HW)) for all pyramid levels."""
    u_parts, p_parts = [], []
    for s in sizes:
        wh = _bilinear_matrix(H, s)
        ww = _bilinear_matrix(W, s)
        u_parts.append(np.einsum("hi,wj->hwij", wh, ww).reshape(H * W, s * s))
        p_parts.append(_pool_matrix(H, W, s))
    return (np.concatenate(u_parts, axis=1).astype(np.float32),
            np.concatenate(p_parts, axis=0).astype(np.float32))


# ------------------------------ tiling helpers ----------------------------- #

def _vmem_capacity_bytes():
    try:
        return int(pltpu.get_tpu_info().vmem_capacity_bytes)
    except Exception:
        return 64 * _MB                 # v7x is the smallest (64 MiB physical)


def _round_up(x, m):
    return ((x + m - 1) // m) * m


def _pick_tile(hw, n_batch, bytes_per_row, fixed_bytes, vmem_budget,
               requested=None, min_steps=16, min_tile=256):
    """Largest spatial tile (divisor of HW, multiple of 8, or HW itself) whose
    working set fits the VMEM budget; shrink (never below min_tile) if that
    leaves fewer than min_steps grid steps for v7x's two TensorCores."""
    if requested is not None:
        assert hw % requested == 0 and (requested % 8 == 0 or requested == hw)
        return requested
    cands = sorted({t for t in range(8, hw, 8) if hw % t == 0} | {hw},
                   reverse=True)
    fits = [t for t in cands if fixed_bytes + t * bytes_per_row <= vmem_budget]
    if not fits:
        return cands[-1]
    best = fits[0]
    if n_batch * (hw // best) < min_steps:
        for t in fits:
            if t >= min_tile and n_batch * (hw // t) >= min_steps:
                best = t
                break
    return best


def _spec(block_shape, index_map, *, single_buffer=False):
    """BlockSpec; single_buffer=True marks operands whose block index does not
    change along the inner grid axis (double buffering buys no overlap there,
    so one buffer halves their VMEM footprint)."""
    if single_buffer and hasattr(pl, "Buffered"):
        return pl.BlockSpec(block_shape, index_map, pipeline_mode=pl.Buffered(1))
    return pl.BlockSpec(block_shape, index_map)


# --------------------------------- kernels --------------------------------- #

def _psp_kernel_split(feats_ref, u_ref, wf_ref, v_ref, bias_ref, out_ref):
    # feats: (1,T,C) bf16   u: (T,S) bf16   wf: (C,Oc) bf16
    # v: (1,S,Oc) bf16      bias: (1,Oc) f32     out: (1,T,Oc) f32/bf16
    acc = jnp.dot(feats_ref[0], wf_ref[...], preferred_element_type=jnp.float32)
    acc = acc + jnp.dot(u_ref[...], v_ref[0], preferred_element_type=jnp.float32)
    out_ref[0] = jnp.maximum(acc + bias_ref[...], 0.0).astype(out_ref.dtype)


def _psp_kernel_fused(x_ref, w_ref, bias_ref, out_ref):
    # x: (1,T,Kc) bf16   w: (1,Kc,Oc) bf16   bias: (1,Oc) f32   out: (1,T,Oc)
    acc = jnp.dot(x_ref[0], w_ref[0], preferred_element_type=jnp.float32)
    out_ref[0] = jnp.maximum(acc + bias_ref[...], 0.0).astype(out_ref.dtype)


# --------------------------------- wrapper --------------------------------- #

def psp_module_pallas(feats_nchw, params, sizes=(1, 2, 3, 6), *,
                      tile_hw=None, out_dtype=jnp.float32, fuse_dots=None):
    N, C, H, W = feats_nchw.shape
    K = len(sizes)
    HW = H * W
    S = sum(s * s for s in sizes)
    O = params["bottleneck_w"].shape[0]

    # Lane-dense output: pad O to a multiple of 128 only when O >= 128; for
    # small O keep the exact width (avoids up-to-4x padded HBM writes).
    Oc = _round_up(O, 128) if O >= 128 else O
    out_bytes = jnp.dtype(out_dtype).itemsize

    # ----------------------- tiny pyramid glue (JAX) ---------------------- #
    u_np, p_np = _host_matrices(H, W, tuple(sizes))
    u_cat = jnp.asarray(u_np)                                  # (HW, S) f32
    p_cat = jnp.asarray(p_np)                                  # (S, HW) f32

    xf32 = feats_nchw.astype(jnp.float32)
    # All K adaptive pools as ONE matmul over the original NCHW layout.
    pooled = jnp.einsum("sp,ncp->nsc", p_cat, xf32.reshape(N, C, HW))  # (N,S,C)

    Wb = params["bottleneck_w"].reshape(O, (K + 1) * C)
    stage_w = params["stage_w"].reshape(K, C, C)
    v_parts, off = [], 0
    for k, s in enumerate(sizes):
        # Fold stage 1x1 conv and the bottleneck slice into one (C, O) matrix.
        fk = jnp.einsum("oc,qo->cq", stage_w[k], Wb[:, k * C:(k + 1) * C])
        v_parts.append(jnp.einsum("nsc,cq->nsq",
                                  pooled[:, off:off + s * s], fk))
        off += s * s
    v_all = jnp.concatenate(v_parts, axis=1)                   # (N, S, O) f32
    w_feats = Wb[:, K * C:].T                                  # (C, O)
    bias = params["bottleneck_b"].reshape(1, O).astype(jnp.float32)

    if Oc != O:
        v_all = jnp.pad(v_all, ((0, 0), (0, 0), (0, Oc - O)))
        w_feats = jnp.pad(w_feats, ((0, 0), (0, Oc - O)))
        bias = jnp.pad(bias, ((0, 0), (0, Oc - O)))

    # bf16 MXU operands (f32 accumulation inside the kernel).  The bf16 NHWC
    # copy is built directly from NCHW — no f32 NHWC intermediate.
    feats_bf = (jnp.transpose(feats_nchw, (0, 2, 3, 1))
                .reshape(N, HW, C).astype(jnp.bfloat16))
    u_bf = u_cat.astype(jnp.bfloat16)
    v_bf = v_all.astype(jnp.bfloat16)
    wf_bf = w_feats.astype(jnp.bfloat16)

    # Fuse the two matmuls only when the upsample columns are a small fraction
    # of C (real PSP: C=2048 >> S=50); at tiny C it only inflates reads.
    if fuse_dots is None:
        fuse_dots = C >= 8 * S

    capacity = _vmem_capacity_bytes()
    vmem_budget = int(0.45 * capacity)
    sem = pltpu.CompilerParams  # alias for brevity below

    if fuse_dots:
        Kc = _round_up(C + S, 128)          # no ragged MXU K-tail (v5e)
        pads = Kc - C - S
        x_parts = [feats_bf, jnp.broadcast_to(u_bf[None], (N, HW, S))]
        w_parts = [jnp.broadcast_to(wf_bf[None], (N, C, Oc)), v_bf]
        if pads:
            x_parts.append(jnp.zeros((N, HW, pads), jnp.bfloat16))
            w_parts.append(jnp.zeros((N, pads, Oc), jnp.bfloat16))
        x_cat = jnp.concatenate(x_parts, axis=-1)              # (N, HW, Kc)
        w_cat = jnp.concatenate(w_parts, axis=1)                # (N, Kc, Oc)

        per_row = 2 * Kc * 2 + 2 * Oc * out_bytes
        fixed = Kc * Oc * 2 + Oc * 4
        T = _pick_tile(HW, N, per_row, fixed, vmem_budget, requested=tile_hw)
        vmem_limit = int(min(max(2 * (fixed + T * per_row), 32 * _MB),
                             0.9 * capacity))

        out = pl.pallas_call(
            _psp_kernel_fused,
            out_shape=jax.ShapeDtypeStruct((N, HW, Oc), out_dtype),
            grid_spec=pltpu.PrefetchScalarGridSpec(
                num_scalar_prefetch=0,
                grid=(N, HW // T),
                in_specs=[
                    _spec((1, T, Kc), lambda n, t: (n, t, 0)),
                    _spec((1, Kc, Oc), lambda n, t: (n, 0, 0),
                          single_buffer=True),
                    _spec((1, Oc), lambda n, t: (0, 0), single_buffer=True),
                ],
                out_specs=pl.BlockSpec((1, T, Oc), lambda n, t: (n, t, 0)),
            ),
            compiler_params=sem(dimension_semantics=("parallel", "parallel"),
                                vmem_limit_bytes=vmem_limit),
        )(x_cat, w_cat, bias)
    else:
        per_row = 2 * C * 2 + 2 * S * 2 + 2 * Oc * out_bytes
        fixed = C * Oc * 2 + S * Oc * 2 + Oc * 4
        T = _pick_tile(HW, N, per_row, fixed, vmem_budget, requested=tile_hw)
        vmem_limit = int(min(max(2 * (fixed + T * per_row), 32 * _MB),
                             0.9 * capacity))

        # If T > Oc the U tile is larger than the V block: swap the grid so U
        # is the revisited block and only the small V is re-DMA'd per step.
        swap = T > Oc
        if swap:
            grid = (HW // T, N)
            feats_map = lambda t, n: (n, t, 0)
            u_map = lambda t, n: (t, 0)
            v_map = lambda t, n: (n, 0, 0)
            const_map = lambda t, n: (0, 0)
            out_map = lambda t, n: (n, t, 0)
            v_single = False       # V block changes along inner (batch) axis
        else:
            grid = (N, HW // T)
            feats_map = lambda n, t: (n, t, 0)
            u_map = lambda n, t: (t, 0)
            v_map = lambda n, t: (n, 0, 0)
            const_map = lambda n, t: (0, 0)
            out_map = lambda n, t: (n, t, 0)
            v_single = True        # V block invariant along inner (tile) axis

        out = pl.pallas_call(
            _psp_kernel_split,
            out_shape=jax.ShapeDtypeStruct((N, HW, Oc), out_dtype),
            grid_spec=pltpu.PrefetchScalarGridSpec(
                num_scalar_prefetch=0,
                grid=grid,
                in_specs=[
                    _spec((1, T, C), feats_map),
                    _spec((T, S), u_map),
                    _spec((C, Oc), const_map, single_buffer=True),
                    _spec((1, S, Oc), v_map, single_buffer=v_single),
                    _spec((1, Oc), const_map, single_buffer=True),
                ],
                out_specs=pl.BlockSpec((1, T, Oc), out_map),
            ),
            compiler_params=sem(dimension_semantics=("parallel", "parallel"),
                                vmem_limit_bytes=vmem_limit),
        )(feats_bf, u_bf, wf_bf, v_bf, bias)

    if Oc != O:
        out = out[:, :, :O]
    out = out.reshape(N, H, W, O)
    return jnp.transpose(out, (0, 3, 1, 2))                    # NCHW


# ---------------------------- pure-JAX reference --------------------------- #

def _adaptive_avg_pool_nhwc(x, s):
    _, H, W, _ = x.shape
    rows = []
    for i in range(s):
        h0, h1 = (i * H) // s, -((-(i + 1) * H) // s)
        cols = []
        for j in range(s):
            w0, w1 = (j * W) // s, -((-(j + 1) * W) // s)
            cols.append(jnp.mean(x[:, h0:h1, w0:w1, :], axis=(1, 2)))
        rows.append(jnp.stack(cols, axis=1))
    return jnp.stack(rows, axis=1)


def psp_module_ref(feats_nchw, params, sizes=(1, 2, 3, 6)):
    N, C, H, W = feats_nchw.shape
    K = len(sizes)
    feats = jnp.transpose(feats_nchw, (0, 2, 3, 1)).astype(jnp.float32)
    priors = []
    for k, s in enumerate(sizes):
        pooled = _adaptive_avg_pool_nhwc(feats, s)
        convd = jnp.einsum("nijc,oc->nijo", pooled,
                           params["stage_w"].reshape(K, C, C)[k])
        wh = jnp.asarray(_bilinear_matrix(H, s))
        ww = jnp.asarray(_bilinear_matrix(W, s))
        priors.append(jnp.einsum("hi,nijc,wj->nhwc", wh, convd, ww))
    priors.append(feats)
    cat = jnp.concatenate(priors, axis=-1)
    O = params["bottleneck_w"].shape[0]
    wb = params["bottleneck_w"].reshape(O, -1)
    out = jnp.einsum("nhwc,oc->nhwo", cat, wb) + params["bottleneck_b"]
    return jnp.transpose(jnp.maximum(out, 0.0), (0, 3, 1, 2))


# ----------------------------------- main ----------------------------------- #

if __name__ == "__main__":
    N, C, H, W, O = 2, 8, 16, 16, 32
    sizes = (1, 2, 3, 6)
    K = len(sizes)

    key = jax.random.PRNGKey(0)
    k_x, k_s, k_b, k_bb = jax.random.split(key, 4)
    x = jax.random.normal(k_x, (N, C, H, W), jnp.float32)
    params = {
        # per-stage 1x1 conv weights (Cout, Cin), bias=False
        "stage_w": 0.1 * jax.random.normal(k_s, (K, C, C), jnp.float32),
        # bottleneck Conv2d((K+1)*C -> O, k=1) weight and bias
        "bottleneck_w": 0.05 * jax.random.normal(
            k_b, (O, (K + 1) * C, 1, 1), jnp.float32),
        "bottleneck_b": 0.01 * jax.random.normal(k_bb, (O,), jnp.float32),
    }

    ref = np.asarray(psp_module_ref(x, params, sizes))

    # 1) Auto config: split kernel, T = HW (swapped-grid branch), f32 output.
    out1 = jax.block_until_ready(psp_module_pallas(x, params, sizes))
    assert out1.shape == (N, O, H, W)
    np.testing.assert_allclose(np.asarray(out1), ref, rtol=2e-2, atol=2e-2)

    # 2) Multi-tile spatial grid on the split path (unswapped grid, T <= O).
    out2 = jax.block_until_ready(
        psp_module_pallas(x, params, sizes, tile_hw=32))
    np.testing.assert_allclose(np.asarray(out2), ref, rtol=2e-2, atol=2e-2)

    # 3) Fused single-matmul path (the real-PSP C >> S configuration) with a
    #    bf16 output (halves HBM write bytes on the HBM-bound v6e/v7x).
    out3 = jax.block_until_ready(
        psp_module_pallas(x, params, sizes, tile_hw=64, fuse_dots=True,
                          out_dtype=jnp.bfloat16))
    np.testing.assert_allclose(np.asarray(out3.astype(jnp.float32)), ref,
                               rtol=3e-2, atol=3e-2)

    print("KERNEL_OK")
</pallas_src>

<mosaic_0001>
module attributes {stable_mosaic.version = 11 : i64} {
  func.func @_psp_kernel_split(%arg0: i32, %arg1: i32, %arg2: memref<1x256x8xbf16, #tpu.memory_space<vmem>>, %arg3: memref<256x50xbf16, #tpu.memory_space<vmem>>, %arg4: memref<8x32xbf16, #tpu.memory_space<vmem>>, %arg5: memref<1x50x32xbf16, #tpu.memory_space<vmem>>, %arg6: memref<1x32xf32, #tpu.memory_space<vmem>>, %arg7: memref<1x256x32xf32, #tpu.memory_space<vmem>>) attributes {dimension_semantics = [#tpu.dimension_semantics<parallel>, #tpu.dimension_semantics<parallel>], iteration_bounds = array<i64: 1, 2>, scalar_prefetch = 0 : i64, scratch_operands = 0 : i64, tpu.core_type = #tpu.core_type<tc>, window_params = [{transform_indices = @transform_0, window_bounds = array<i64: 1, 256, 8>}, {transform_indices = @transform_1, window_bounds = array<i64: 256, 50>}, {pipeline_mode = #tpu.pipeline_mode<synchronous>, transform_indices = @transform_2, window_bounds = array<i64: 8, 32>}, {transform_indices = @transform_3, window_bounds = array<i64: 1, 50, 32>}, {pipeline_mode = #tpu.pipeline_mode<synchronous>, transform_indices = @transform_4, window_bounds = array<i64: 1, 32>}, {transform_indices = @transform_5, window_bounds = array<i64: 1, 256, 32>}]} {
    %c0 = arith.constant 0 : index
    %c0_0 = arith.constant 0 : index
    %c0_1 = arith.constant 0 : index
    %0 = vector.load %arg2[%c0, %c0_0, %c0_1] : memref<1x256x8xbf16, #tpu.memory_space<vmem>>, vector<1x256x8xbf16>
    %1 = vector.shape_cast %0 : vector<1x256x8xbf16> to vector<256x8xbf16>
    %c0_2 = arith.constant 0 : index
    %c0_3 = arith.constant 0 : index
    %2 = vector.load %arg4[%c0_2, %c0_3] : memref<8x32xbf16, #tpu.memory_space<vmem>>, vector<8x32xbf16>
    %cst = arith.constant dense<0.000000e+00> : vector<256x32xf32>
    %3 = tpu.matmul %1, %2, %cst {dimension_numbers = #tpu.dot_dimension_numbers<[1], [0], [0], [1], [0, 0, 1, 1], [], []>} : vector<256x8xbf16>, vector<8x32xbf16>, vector<256x32xf32> -> vector<256x32xf32>
    %c0_4 = arith.constant 0 : index
    %c0_5 = arith.constant 0 : index
    %4 = vector.load %arg3[%c0_4, %c0_5] : memref<256x50xbf16, #tpu.memory_space<vmem>>, vector<256x50xbf16>
    %c0_6 = arith.constant 0 : index
    %c0_7 = arith.constant 0 : index
    %c0_8 = arith.constant 0 : index
    %5 = vector.load %arg5[%c0_6, %c0_7, %c0_8] : memref<1x50x32xbf16, #tpu.memory_space<vmem>>, vector<1x50x32xbf16>
    %6 = vector.shape_cast %5 : vector<1x50x32xbf16> to vector<50x32xbf16>
    %cst_9 = arith.constant dense<0.000000e+00> : vector<256x32xf32>
    %7 = tpu.matmul %4, %6, %cst_9 {dimension_numbers = #tpu.dot_dimension_numbers<[1], [0], [0], [1], [0, 0, 1, 1], [], []>} : vector<256x50xbf16>, vector<50x32xbf16>, vector<256x32xf32> -> vector<256x32xf32>
    %8 = arith.addf %3, %7 : vector<256x32xf32>
    %c0_10 = arith.constant 0 : index
    %c0_11 = arith.constant 0 : index
    %9 = vector.load %arg6[%c0_10, %c0_11] : memref<1x32xf32, #tpu.memory_space<vmem>>, vector<1x32xf32>
    %10 = vector.broadcast %9 : vector<1x32xf32> to vector<256x32xf32>
    %11 = arith.addf %8, %10 : vector<256x32xf32>
    %cst_12 = arith.constant 0.000000e+00 : f32
    %12 = vector.broadcast %cst_12 : f32 to vector<256x32xf32>
    %13 = arith.maximumf %11, %12 : vector<256x32xf32>
    %c0_13 = arith.constant 0 : index
    %c0_14 = arith.constant 0 : index
    %c0_15 = arith.constant 0 : index
    %14 = vector.load %arg7[%c0_13, %c0_14, %c0_15] : memref<1x256x32xf32, #tpu.memory_space<vmem>>, vector<1x256x32xf32>
    %15 = vector.shape_cast %14 : vector<1x256x32xf32> to vector<256x32xf32>
    %16 = vector.shape_cast %13 : vector<256x32xf32> to vector<1x256x32xf32>
    tpu.vector_store %arg7[%c0_13, %c0_14, %c0_15], %16 {strides = array<i32>} : memref<1x256x32xf32, #tpu.memory_space<vmem>>, vector<1x256x32xf32>,
    return
  }
  func.func @transform_0(%arg0: i32, %arg1: i32) -> (i32, i32, i32) {
    %c0_i32 = arith.constant 0 : i32
    %c0_i32_0 = arith.constant 0 : i32
    return %arg1, %arg0, %c0_i32 : i32, i32, i32
  }
  func.func @transform_1(%arg0: i32, %arg1: i32) -> (i32, i32) {
    %c0_i32 = arith.constant 0 : i32
    %c0_i32_0 = arith.constant 0 : i32
    return %arg0, %c0_i32 : i32, i32
  }
  func.func @transform_2(%arg0: i32, %arg1: i32) -> (i32, i32) {
    %c0_i32 = arith.constant 0 : i32
    %c0_i32_0 = arith.constant 0 : i32
    %c0_i32_1 = arith.constant 0 : i32
    return %c0_i32, %c0_i32_0 : i32, i32
  }
  func.func @transform_3(%arg0: i32, %arg1: i32) -> (i32, i32, i32) {
    %c0_i32 = arith.constant 0 : i32
    %c0_i32_0 = arith.constant 0 : i32
    %c0_i32_1 = arith.constant 0 : i32
    return %arg1, %c0_i32, %c0_i32_0 : i32, i32, i32
  }
  func.func @transform_4(%arg0: i32, %arg1: i32) -> (i32, i32) {
    %c0_i32 = arith.constant 0 : i32
    %c0_i32_0 = arith.constant 0 : i32
    %c0_i32_1 = arith.constant 0 : i32
    return %c0_i32, %c0_i32_0 : i32, i32
  }
  func.func @transform_5(%arg0: i32, %arg1: i32) -> (i32, i32, i32) {
    %c0_i32 = arith.constant 0 : i32
    %c0_i32_0 = arith.constant 0 : i32
    return %arg1, %arg0, %c0_i32 : i32, i32, i32
  }
}

</mosaic_0001>

<bundles_post_ra>
// kernel: tpu_custom_call.1
= control target key start
LH: loop header
LB: loop body
LE: loop exit
PB: predicated region body
PF: predicated region fallthrough
CT: control target
= control target key end

     0   :  { %s1518_s18 = smov 0   ;;  %s1520_s19 = smov 0   ;;  %s1763_s0 = inlined_call_operand.vmem [shape: bf16[2,256,8], index: 0, kind: input, shape index: {}]   ;;  %s1764_s1 = inlined_call_operand.vmem [shape: bf16[256,50], index: 1, kind: input, shape index: {}]   ;;  %s1765_s2 = inlined_call_operand.vmem [shape: bf16[8,32], index: 2, kind: input, shape index: {}]   ;;  %s1766_s3 = inlined_call_operand.vmem [shape: bf16[2,50,32], index: 3, kind: input, shape index: {}]   ;;  %s1767_s4 = inlined_call_operand.vmem [shape: f32[1,32], index: 4, kind: input, shape index: {}]   ;;  %s1768_s5 = inlined_call_operand.vmem [shape: f32[2,256,32], index: 5, kind: output, shape index: {}]  }
   0x1   :  { %s1522_s20 = smov 0  }
   0x2 LB: > { %s24_s21 = sadd.s32 1, %s1482_s19  ;;  %p1211_p0 = scmp.ge.s32.totalorder %s1486_s20, 1  ;;  %s1486_s20 = sphi %s1522_s20, %s15_s20   ;;  %s1482_s19 = sphi %s1520_s19, %s1770_s19   ;;  %s1478_s18 = sphi %s1518_s18, %s1769_s18  }
   0x3   : > { %p25_p1 = scmp.ge.s32.totalorder %s24_s21, 2  ;;  %p229_p2 = scmp.lt.s32.totalorder %s1486_s20, 3 }
   0x5   : > { %s1772_s21 = smov (%p25_p1, %s24_s21), 0  ;;  %p230_p3 = pnand %p1211_p0, %p229_p2 }
   0x6   : > { %p276_p4 = scmp.lt.s32.totalorder (!%p230_p3), %s1478_s18, 1 }
   0x7   : > { %233 = sbr.rel (%p230_p3) target bundleno = 295 (0x127), region = 40 }
   0xc   : > { %v339_v0 = vld [vmem:[%s1765_s2] sm:$0xf]  ;;  %vm823_vm0 = vcmask 1043456   ;;  %s1774_s18 = smov (!%p276_p4, %s1478_s18), 1  ;;  %vm480_vm1 = vcmask 408576   ;;  %vm774_vm2 = vcmask 64512  }
   0xd   : > { %1402 = vmatprep.subr.msk.bf16.mxu1 %vm823_vm0, %v339_v0  ;;  %v825_v1 = vsel %vm823_vm0, %v339_v0, 0  ;;  %v1434_v2 = vld [vmem:[%s1764_s1] sm:$0xff]   ;;  %s1288_s26 = sshll.u32 %s1774_s18, 7  ;;  %s1403_s27 = smul.u32 28, %s1774_s18  ;;  %vm529_vm3 = vcmask 1040384   ;;  %v1435_v13 = vld [vmem:[%s1764_s1 + $0x8] sm:$0xff]  }
   0xe   : > { %1368 = vmatpush3.bf16.msra.mxu1 %v825_v1  ;;  %1335 = vmatprep.mubr.msk.bf16.mxu0 %vm480_vm1, %v1434_v2  ;;  %s1550_s30 = scalar_lea.vmem %s1763_s0, %s1288_s26  ;;  %v1438_v14 = vld [vmem:[%s1764_s1 + $0x10] sm:$0xff]   ;;  %v1439_v17 = vld [vmem:[%s1764_s1 + $0x18] sm:$0xff]   ;;  %v1442_v18 = vld [vmem:[%s1764_s1 + $0x20] sm:$0xff]   ;;  %s1289_s24 = sshll.u32 %s1774_s18, 8  ;;  %vm1059_vm4 = vcmask 261120  }
   0xf   : > { %s295_s8 = scalar_lea.vmem %s1766_s3, %s1403_s27  ;;  %v1431_v3 = vld [vmem:[%s1550_s30] sm:$0xff]   ;;  %v1432_v7 = vld [vmem:[%s1550_s30 + $0x8] sm:$0xff]   ;;  %v1436_v9 = vld [vmem:[%s1550_s30 + $0x10] sm:$0xff]   ;;  %s1657_s27 = scalar_lea.vmem %s1768_s5, %s1289_s24 }
  0x10   : > { %v1428_v4 = vld [vmem:[%s295_s8 + $0x18] ss:$0 sps:$4 sm:$0x11]   ;;  %v1429_v5 = vld [vmem:[%s295_s8 + $0x10] sm:$0xff]   ;;  %1369 = vmatprep.mubr.msk.bf16.mxu1 %vm774_vm2, %v1431_v3  ;;  %v1430_v8 = vld [vmem:[%s295_s8 + $0x8] sm:$0xff]  }
  0x11   : > { %1401 = vmatprep.subr.msk.bf16.mxu0 %vm529_vm3, %v1428_v4  ;;  %v531_v6 = vsel %vm529_vm3, %v1428_v4, 0  ;;  %1370 = vmatmul.mubr.msk.bf16.vlgmr.msra.gmra.mxu1 %vm774_vm2, %v1432_v7  ;;  %v1433_v10 = vld [vmem:[%s295_s8] sm:$0xff]   ;;  %v1437_v11 = vld [vmem:[%s1550_s30 + $0x18] sm:$0xff]   ;;  %v1441_v15 = vld [vmem:[%s1550_s30 + $0x28] sm:$0xff]  }
  0x12   : > { %1328 = vmatpush3.bf16.msra.mxu0 %v531_v6  ;;  %1373 = vmatprep.mubr.msk.bf16.mxu1 %vm774_vm2, %v1436_v9  ;;  %v1440_v12 = vld [vmem:[%s1550_s30 + $0x20] sm:$0xff]   ;;  %v1444_v16 = vld [vmem:[%s1550_s30 + $0x30] sm:$0xff]   ;;  %v1445_v19 = vld [vmem:[%s1550_s30 + $0x38] sm:$0xff]  }
  0x13   : > { %1329 = vmatprep.subr.bf16.mxu0 %v1429_v5  ;;  %v1448_v20 = vld [vmem:[%s1550_s30 + $0x40] sm:$0xff]   ;;  %v1443_v21 = vld [vmem:[%s1764_s1 + $0x28] sm:$0xff]   ;;  %v1446_v22 = vld [vmem:[%s1764_s1 + $0x30] sm:$0xff]  }
  0x14   : > { %v1449_v23 = vld [vmem:[%s1550_s30 + $0x48] sm:$0xff]   ;;  %v1452_v24 = vld [vmem:[%s1550_s30 + $0x50] sm:$0xff]   ;;  %v1447_v25 = vld [vmem:[%s1764_s1 + $0x38] sm:$0xff]  }
  0x15   : > { %v1450_v26 = vld [vmem:[%s1764_s1 + $0x40] sm:$0xff]   ;;  %v1453_v27 = vld [vmem:[%s1550_s30 + $0x58] sm:$0xff]   ;;  %v1451_v29 = vld [vmem:[%s1764_s1 + $0x48] sm:$0xff]  }
  0x16   : > { %1330 = vmatpush3.bf16.msra.mxu0 %v1429_v5  ;;  %v1456_v28 = vld [vmem:[%s1550_s30 + $0x60] sm:$0xff]   ;;  %v1454_v30 = vld [vmem:[%s1764_s1 + $0x50] sm:$0xff]   ;;  %v1457_v31 = vld [vmem:[%s1550_s30 + $0x68] sm:$0xff]  }
  0x17   : > { %1331 = vmatprep.subr.bf16.mxu0 %v1430_v8  ;;  %v1460_v32 = vld [vmem:[%s1550_s30 + $0x70] sm:$0xff]   ;;  %v1455_v33 = vld [vmem:[%s1764_s1 + $0x58] sm:$0xff]   ;;  %v1458_v34 = vld [vmem:[%s1764_s1 + $0x60] sm:$0xff]  }
  0x18   : > { %v1461_v35 = vld [vmem:[%s1550_s30 + $0x78] sm:$0xff]   ;;  %v1459_v36 = vld [vmem:[%s1764_s1 + $0x68] sm:$0xff]   ;;  %v1462_v37 = vld [vmem:[%s1764_s1 + $0x70] sm:$0xff]  }
  0x19   : > { %1374 = vmatmul.mubr.msk.bf16.gmra.mxu1 %vm774_vm2, %v1437_v11  ;;  %v1463_v38 = vld [vmem:[%s1764_s1 + $0x78] sm:$0xff]   ;;  %v1650_v47 = vld [vmem:[%s1767_s4] ss:$0 sm:$0xff] }
  0x1a   : > { %1332 = vmatpush3.bf16.msra.mxu0 %v1430_v8  ;;  %1377 = vmatprep.mubr.msk.bf16.mxu1 %vm774_vm2, %v1440_v12 }
  0x1b   : > { %1333 = vmatprep.subr.bf16.mxu0 %v1433_v10 }
  0x1e   : > { %1334 = vmatpush3.bf16.msra.mxu0 %v1433_v10 }
  0x21   : > { %1336 = vmatmul.mubr.msk.bf16.vlgmr.msra.gmra.mxu0 %vm480_vm1, %v1435_v13  ;;  %1378 = vmatmul.mubr.msk.bf16.gmra.mxu1 %vm774_vm2, %v1441_v15 }
  0x22   : > { %1339 = vmatprep.mubr.msk.bf16.mxu0 %vm480_vm1, %v1438_v14  ;;  %1381 = vmatprep.mubr.msk.bf16.mxu1 %vm774_vm2, %v1444_v16 }
  0x29   : > { %1340 = vmatmul.mubr.msk.bf16.gmra.mxu0 %vm480_vm1, %v1439_v17  ;;  %1382 = vmatmul.mubr.msk.bf16.gmra.mxu1 %vm774_vm2, %v1445_v19 }
  0x2a   : > { %1343 = vmatprep.mubr.msk.bf16.mxu0 %vm480_vm1, %v1442_v18  ;;  %1385 = vmatprep.mubr.msk.bf16.mxu1 %vm774_vm2, %v1448_v20 }
  0x31   : > { %1344 = vmatmul.mubr.msk.bf16.gmra.mxu0 %vm480_vm1, %v1443_v21  ;;  %1386 = vmatmul.mubr.msk.bf16.gmra.mxu1 %vm774_vm2, %v1449_v23 }
  0x32   : > { %1347 = vmatprep.mubr.msk.bf16.mxu0 %vm480_vm1, %v1446_v22  ;;  %1389 = vmatprep.mubr.msk.bf16.mxu1 %vm774_vm2, %v1452_v24 }
  0x39   : > { %1348 = vmatmul.mubr.msk.bf16.gmra.mxu0 %vm480_vm1, %v1447_v25  ;;  %1390 = vmatmul.mubr.msk.bf16.gmra.mxu1 %vm774_vm2, %v1453_v27 }
  0x3a   : > { %1351 = vmatprep.mubr.msk.bf16.mxu0 %vm480_vm1, %v1450_v26  ;;  %1393 = vmatprep.mubr.msk.bf16.mxu1 %vm774_vm2, %v1456_v28 }
  0x41   : > { %1352 = vmatmul.mubr.msk.bf16.gmra.mxu0 %vm480_vm1, %v1451_v29  ;;  %1394 = vmatmul.mubr.msk.bf16.gmra.mxu1 %vm774_vm2, %v1457_v31 }
  0x42   : > { %1355 = vmatprep.mubr.msk.bf16.mxu0 %vm480_vm1, %v1454_v30  ;;  %1397 = vmatprep.mubr.msk.bf16.mxu1 %vm774_vm2, %v1460_v32 }
  0x49   : > { %1356 = vmatmul.mubr.msk.bf16.gmra.mxu0 %vm480_vm1, %v1455_v33  ;;  %1398 = vmatmul.mubr.msk.bf16.gmra.mxu1 %vm774_vm2, %v1461_v35 }
  0x4a   : > { %1359 = vmatprep.mubr.msk.bf16.mxu0 %vm480_vm1, %v1458_v34 }
  0x51   : > { %1360 = vmatmul.mubr.msk.bf16.gmra.mxu0 %vm480_vm1, %v1459_v36 }
  0x52   : > { %1363 = vmatprep.mubr.msk.bf16.mxu0 %vm480_vm1, %v1462_v37 }
  0x59   : > { %1364 = vmatmul.mubr.msk.bf16.gmra.mxu0 %vm480_vm1, %v1463_v38 }
  0xd1   : > { %v1371_v39 = vpop.f32.mrf.mxu1 }
  0xd3   : > { %v861_v40 = vpop.f32.mrf.mxu1 }
  0xd5   : > { %v1372_v41 = vpop.f32.mrf.mxu1 }
  0xd7   : > { %v864_v42 = vpop.f32.mrf.mxu1 }
  0xd9   : > { %v1375_v43 = vpop.f32.mrf.mxu1 }
  0xdb   : > { %v877_v44 = vpop.f32.mrf.mxu1 }
  0xdd   : > { %v1376_v45 = vpop.f32.mrf.mxu1 }
  0xdf   : > { %v880_v49 = vpop.f32.mrf.mxu1 }
  0xe1   : > { %v1337_v46 = vpop.f32.mrf.mxu0  ;;  %v1379_v53 = vpop.f32.mrf.mxu1 }
  0xe2   : > { %v870_v48 = vadd.f32 %v1371_v39, %v1337_v46 }
  0xe3   : > { %v567_v50 = vpop.f32.mrf.mxu0  ;;  %v893_v58 = vpop.f32.mrf.mxu1 }
  0xe4   : > { %v997_v51 = vadd.f32 %v1650_v47, %v870_v48  ;;  %v862_v52 = vadd.f32 %v861_v40, %v567_v50 }
  0xe5   : > { %v1338_v54 = vpop.f32.mrf.mxu0  ;;  %v1380_v63 = vpop.f32.mrf.mxu1 }
  0xe6   : > { %v1029_v55 = vmax.f32 %v997_v51, 0.0  ;;  %v995_v56 = vadd.f32 %v1650_v47, %v862_v52  ;;  %v873_v57 = vadd.f32 %v1372_v41, %v1338_v54 }
  0xe7   : > { %v570_v59 = vpop.f32.mrf.mxu0  ;;  %v896_v4 = vpop.f32.mrf.mxu1 }
  0xe8   : > { %1062 = vst.msk [vmem:[%s1657_s27 + $0x10] sm:$0xff] %vm1059_vm4, %v1029_v55  ;;  %v1027_v60 = vmax.f32 %v995_v56, 0.0  ;;  %v998_v61 = vadd.f32 %v1650_v47, %v873_v57  ;;  %v865_v62 = vadd.f32 %v864_v42, %v570_v59 }
  0xe9   : > { %v1341_v0 = vpop.f32.mrf.mxu0  ;;  %v1383_v9 = vpop.f32.mrf.mxu1 }
  0xea   : > { %1060 = vst.msk [vmem:[%s1657_s27] sm:$0xff] %vm1059_vm4, %v1027_v60  ;;  %v1030_v1 = vmax.f32 %v998_v61, 0.0  ;;  %v996_v2 = vadd.f32 %v1650_v47, %v865_v62  ;;  %v886_v3 = vadd.f32 %v1375_v43, %v1341_v0 }
  0xeb   : > { %v583_v5 = vpop.f32.mrf.mxu0  ;;  %v909_v14 = vpop.f32.mrf.mxu1 }
  0xec   : > { %1063 = vst.msk [vmem:[%s1657_s27 + $0x18] sm:$0xff] %vm1059_vm4, %v1030_v1  ;;  %v1028_v6 = vmax.f32 %v996_v2, 0.0  ;;  %v1001_v7 = vadd.f32 %v1650_v47, %v886_v3  ;;  %v878_v8 = vadd.f32 %v877_v44, %v583_v5 }
  0xed   : > { %v1342_v10 = vpop.f32.mrf.mxu0  ;;  %v1384_v19 = vpop.f32.mrf.mxu1 }
  0xee   : > { %1061 = vst.msk [vmem:[%s1657_s27 + $0x8] sm:$0xff] %vm1059_vm4, %v1028_v6  ;;  %v1033_v11 = vmax.f32 %v1001_v7, 0.0  ;;  %v999_v12 = vadd.f32 %v1650_v47, %v878_v8  ;;  %v889_v13 = vadd.f32 %v1376_v45, %v1342_v10 }
  0xef   : > { %v586_v15 = vpop.f32.mrf.mxu0  ;;  %v912_v24 = vpop.f32.mrf.mxu1 }
  0xf0   : > { %1066 = vst.msk [vmem:[%s1657_s27 + $0x30] sm:$0xff] %vm1059_vm4, %v1033_v11  ;;  %v1031_v16 = vmax.f32 %v999_v12, 0.0  ;;  %v1002_v17 = vadd.f32 %v1650_v47, %v889_v13  ;;  %v881_v18 = vadd.f32 %v880_v49, %v586_v15 }
  0xf1   : > { %v1345_v20 = vpop.f32.mrf.mxu0  ;;  %v1387_v29 = vpop.f32.mrf.mxu1 }
  0xf2   : > { %1064 = vst.msk [vmem:[%s1657_s27 + $0x20] sm:$0xff] %vm1059_vm4, %v1031_v16  ;;  %v1034_v21 = vmax.f32 %v1002_v17, 0.0  ;;  %v1000_v22 = vadd.f32 %v1650_v47, %v881_v18  ;;  %v902_v23 = vadd.f32 %v1379_v53, %v1345_v20 }
  0xf3   : > { %v599_v25 = vpop.f32.mrf.mxu0  ;;  %v925_v34 = vpop.f32.mrf.mxu1 }
  0xf4   : > { %1067 = vst.msk [vmem:[%s1657_s27 + $0x38] sm:$0xff] %vm1059_vm4, %v1034_v21  ;;  %v1032_v26 = vmax.f32 %v1000_v22, 0.0  ;;  %v1005_v27 = vadd.f32 %v1650_v47, %v902_v23  ;;  %v894_v28 = vadd.f32 %v893_v58, %v599_v25 }
  0xf5   : > { %v1346_v30 = vpop.f32.mrf.mxu0  ;;  %v1388_v39 = vpop.f32.mrf.mxu1 }
  0xf6   : > { %1065 = vst.msk [vmem:[%s1657_s27 + $0x28] sm:$0xff] %vm1059_vm4, %v1032_v26  ;;  %v1037_v31 = vmax.f32 %v1005_v27, 0.0  ;;  %v1003_v32 = vadd.f32 %v1650_v47, %v894_v28  ;;  %v905_v33 = vadd.f32 %v1380_v63, %v1346_v30 }
  0xf7   : > { %v602_v35 = vpop.f32.mrf.mxu0  ;;  %v928_v44 = vpop.f32.mrf.mxu1 }
  0xf8   : > { %1070 = vst.msk [vmem:[%s1657_s27 + $0x50] sm:$0xff] %vm1059_vm4, %v1037_v31  ;;  %v1035_v36 = vmax.f32 %v1003_v32, 0.0  ;;  %v1006_v37 = vadd.f32 %v1650_v47, %v905_v33  ;;  %v897_v38 = vadd.f32 %v896_v4, %v602_v35 }
  0xf9   : > { %v1349_v40 = vpop.f32.mrf.mxu0  ;;  %v1391_v50 = vpop.f32.mrf.mxu1 }
  0xfa   : > { %1068 = vst.msk [vmem:[%s1657_s27 + $0x40] sm:$0xff] %vm1059_vm4, %v1035_v36  ;;  %v1038_v41 = vmax.f32 %v1006_v37, 0.0  ;;  %v1004_v42 = vadd.f32 %v1650_v47, %v897_v38  ;;  %v918_v43 = vadd.f32 %v1383_v9, %v1349_v40 }
  0xfb   : > { %v615_v45 = vpop.f32.mrf.mxu0  ;;  %v941_v55 = vpop.f32.mrf.mxu1 }
  0xfc   : > { %1071 = vst.msk [vmem:[%s1657_s27 + $0x58] sm:$0xff] %vm1059_vm4, %v1038_v41  ;;  %v1036_v46 = vmax.f32 %v1004_v42, 0.0  ;;  %v1009_v48 = vadd.f32 %v1650_v47, %v918_v43  ;;  %v910_v49 = vadd.f32 %v909_v14, %v615_v45 }
  0xfd   : > { %v1350_v51 = vpop.f32.mrf.mxu0  ;;  %v1392_v60 = vpop.f32.mrf.mxu1 }
  0xfe   : > { %1069 = vst.msk [vmem:[%s1657_s27 + $0x48] sm:$0xff] %vm1059_vm4, %v1036_v46  ;;  %v1041_v52 = vmax.f32 %v1009_v48, 0.0  ;;  %v1007_v53 = vadd.f32 %v1650_v47, %v910_v49  ;;  %v921_v54 = vadd.f32 %v1384_v19, %v1350_v51 }
  0xff   : > { %v618_v56 = vpop.f32.mrf.mxu0  ;;  %v944_v1 = vpop.f32.mrf.mxu1 }
 0x100   : > { %1074 = vst.msk [vmem:[%s1657_s27 + $0x70] sm:$0xff] %vm1059_vm4, %v1041_v52  ;;  %v1039_v57 = vmax.f32 %v1007_v53, 0.0  ;;  %v1010_v58 = vadd.f32 %v1650_v47, %v921_v54  ;;  %v913_v59 = vadd.f32 %v912_v24, %v618_v56 }
 0x101   : > { %v1353_v61 = vpop.f32.mrf.mxu0  ;;  %v1395_v6 = vpop.f32.mrf.mxu1 }
 0x102   : > { %1072 = vst.msk [vmem:[%s1657_s27 + $0x60] sm:$0xff] %vm1059_vm4, %v1039_v57  ;;  %v1042_v62 = vmax.f32 %v1010_v58, 0.0  ;;  %v1008_v63 = vadd.f32 %v1650_v47, %v913_v59  ;;  %v934_v0 = vadd.f32 %v1387_v29, %v1353_v61 }
 0x103   : > { %v631_v2 = vpop.f32.mrf.mxu0  ;;  %v957_v12 = vpop.f32.mrf.mxu1 }
 0x104   : > { %1075 = vst.msk [vmem:[%s1657_s27 + $0x78] sm:$0xff] %vm1059_vm4, %v1042_v62  ;;  %v1040_v3 = vmax.f32 %v1008_v63, 0.0  ;;  %v1013_v4 = vadd.f32 %v1650_v47, %v934_v0  ;;  %v926_v5 = vadd.f32 %v925_v34, %v631_v2 }
 0x105   : > { %v1354_v7 = vpop.f32.mrf.mxu0  ;;  %v1396_v21 = vpop.f32.mrf.mxu1 }
 0x106   : > { %1073 = vst.msk [vmem:[%s1657_s27 + $0x68] sm:$0xff] %vm1059_vm4, %v1040_v3  ;;  %v1045_v8 = vmax.f32 %v1013_v4, 0.0  ;;  %v1011_v9 = vadd.f32 %v1650_v47, %v926_v5  ;;  %v937_v10 = vadd.f32 %v1388_v39, %v1354_v7 }
 0x107   : > { %v634_v11 = vpop.f32.mrf.mxu0  ;;  %v960_v30 = vpop.f32.mrf.mxu1 }
 0x108   : > { %1078 = vst.msk [vmem:[%s1657_s27 + $0x90] sm:$0xff] %vm1059_vm4, %v1045_v8  ;;  %v1043_v13 = vmax.f32 %v1011_v9, 0.0  ;;  %v1014_v14 = vadd.f32 %v1650_v47, %v937_v10  ;;  %v929_v15 = vadd.f32 %v928_v44, %v634_v11 }
 0x109   : > { %v1357_v16 = vpop.f32.mrf.mxu0  ;;  %v1399_v39 = vpop.f32.mrf.mxu1 }
 0x10a   : > { %1076 = vst.msk [vmem:[%s1657_s27 + $0x80] sm:$0xff] %vm1059_vm4, %v1043_v13  ;;  %v1046_v17 = vmax.f32 %v1014_v14, 0.0  ;;  %v1012_v18 = vadd.f32 %v1650_v47, %v929_v15  ;;  %v950_v19 = vadd.f32 %v1391_v50, %v1357_v16 }
 0x10b   : > { %v647_v20 = vpop.f32.mrf.mxu0  ;;  %v973_v48 = vpop.f32.mrf.mxu1 }
 0x10c   : > { %1079 = vst.msk [vmem:[%s1657_s27 + $0x98] sm:$0xff] %vm1059_vm4, %v1046_v17  ;;  %v1044_v22 = vmax.f32 %v1012_v18, 0.0  ;;  %v1017_v23 = vadd.f32 %v1650_v47, %v950_v19  ;;  %v942_v24 = vadd.f32 %v941_v55, %v647_v20 }
 0x10d   : > { %v1358_v25 = vpop.f32.mrf.mxu0  ;;  %v1400_v57 = vpop.f32.mrf.mxu1 }
 0x10e   : > { %1077 = vst.msk [vmem:[%s1657_s27 + $0x88] sm:$0xff] %vm1059_vm4, %v1044_v22  ;;  %v1049_v26 = vmax.f32 %v1017_v23, 0.0  ;;  %v1015_v27 = vadd.f32 %v1650_v47, %v942_v24  ;;  %v953_v28 = vadd.f32 %v1392_v60, %v1358_v25 }
 0x10f   : > { %v650_v29 = vpop.f32.mrf.mxu0  ;;  %v976_v2 = vpop.f32.mrf.mxu1 }
 0x110   : > { %1082 = vst.msk [vmem:[%s1657_s27 + $0xb0] sm:$0xff] %vm1059_vm4, %v1049_v26  ;;  %v1047_v31 = vmax.f32 %v1015_v27, 0.0  ;;  %v1018_v32 = vadd.f32 %v1650_v47, %v953_v28  ;;  %v945_v33 = vadd.f32 %v944_v1, %v650_v29 }
 0x111   : > { %v1361_v34 = vpop.f32.mrf.mxu0 }
 0x112   : > { %1080 = vst.msk [vmem:[%s1657_s27 + $0xa0] sm:$0xff] %vm1059_vm4, %v1047_v31  ;;  %v1050_v35 = vmax.f32 %v1018_v32, 0.0  ;;  %v1016_v36 = vadd.f32 %v1650_v47, %v945_v33  ;;  %v966_v37 = vadd.f32 %v1395_v6, %v1361_v34 }
 0x113   : > { %v663_v38 = vpop.f32.mrf.mxu0 }
 0x114   : > { %1083 = vst.msk [vmem:[%s1657_s27 + $0xb8] sm:$0xff] %vm1059_vm4, %v1050_v35  ;;  %v1048_v40 = vmax.f32 %v1016_v36, 0.0  ;;  %v1021_v41 = vadd.f32 %v1650_v47, %v966_v37  ;;  %v958_v42 = vadd.f32 %v957_v12, %v663_v38 }
 0x115   : > { %v1362_v43 = vpop.f32.mrf.mxu0 }
 0x116   : > { %1081 = vst.msk [vmem:[%s1657_s27 + $0xa8] sm:$0xff] %vm1059_vm4, %v1048_v40  ;;  %v1053_v44 = vmax.f32 %v1021_v41, 0.0  ;;  %v1019_v45 = vadd.f32 %v1650_v47, %v958_v42  ;;  %v969_v46 = vadd.f32 %v1396_v21, %v1362_v43 }
 0x117   : > { %v666_v49 = vpop.f32.mrf.mxu0 }
 0x118   : > { %1086 = vst.msk [vmem:[%s1657_s27 + $0xd0] sm:$0xff] %vm1059_vm4, %v1053_v44  ;;  %v1051_v50 = vmax.f32 %v1019_v45, 0.0  ;;  %v1022_v51 = vadd.f32 %v1650_v47, %v969_v46  ;;  %v961_v52 = vadd.f32 %v960_v30, %v666_v49 }
 0x119   : > { %v1365_v53 = vpop.f32.mrf.mxu0 }
 0x11a   : > { %1084 = vst.msk [vmem:[%s1657_s27 + $0xc0] sm:$0xff] %vm1059_vm4, %v1051_v50  ;;  %v1054_v54 = vmax.f32 %v1022_v51, 0.0  ;;  %v1020_v55 = vadd.f32 %v1650_v47, %v961_v52  ;;  %v982_v56 = vadd.f32 %v1399_v39, %v1365_v53 }
 0x11b   : > { %v679_v58 = vpop.f32.mrf.mxu0 }
 0x11c   : > { %1087 = vst.msk [vmem:[%s1657_s27 + $0xd8] sm:$0xff] %vm1059_vm4, %v1054_v54  ;;  %v1052_v59 = vmax.f32 %v1020_v55, 0.0  ;;  %v1025_v60 = vadd.f32 %v1650_v47, %v982_v56  ;;  %v974_v61 = vadd.f32 %v973_v48, %v679_v58 }
 0x11d   : > { %v1366_v62 = vpop.f32.mrf.mxu0 }
 0x11e   : > { %1085 = vst.msk [vmem:[%s1657_s27 + $0xc8] sm:$0xff] %vm1059_vm4, %v1052_v59  ;;  %v1057_v63 = vmax.f32 %v1025_v60, 0.0  ;;  %v1023_v0 = vadd.f32 %v1650_v47, %v974_v61  ;;  %v985_v1 = vadd.f32 %v1400_v57, %v1366_v62 }
 0x11f   : > { %v682_v3 = vpop.f32.mrf.mxu0 }
 0x120   : > { %1090 = vst.msk [vmem:[%s1657_s27 + $0xf0] sm:$0xff] %vm1059_vm4, %v1057_v63  ;;  %v1055_v4 = vmax.f32 %v1023_v0, 0.0  ;;  %v1026_v5 = vadd.f32 %v1650_v47, %v985_v1  ;;  %v977_v6 = vadd.f32 %v976_v2, %v682_v3 }
 0x122   : > { %1088 = vst.msk [vmem:[%s1657_s27 + $0xe0] sm:$0xff] %vm1059_vm4, %v1055_v4  ;;  %v1058_v7 = vmax.f32 %v1026_v5, 0.0  ;;  %v1024_v8 = vadd.f32 %v1650_v47, %v977_v6 }
 0x124   : > { %1091 = vst.msk [vmem:[%s1657_s27 + $0xf8] sm:$0xff] %vm1059_vm4, %v1058_v7  ;;  %v1056_v9 = vmax.f32 %v1024_v8, 0.0 }
 0x126   : > { %1089 = vst.msk [vmem:[%s1657_s27 + $0xe8] sm:$0xff] %vm1059_vm4, %v1056_v9 }
 0x127 PF: > { %s15_s20 = sadd.s32 1, %s1486_s20   ;;  %s1769_s18 = smov %s1482_s19 }
 0x128   : > { %p12_p5 = scmp.ge.s32.totalorder %s15_s20, 4   ;;  %s1770_s19 = smov %s1772_s21 }
 0x12a   :  { %14 = sbr.rel (!%p12_p5) target bundleno = 2 (0x2), region = 76 }

</bundles_post_ra>
